<compile_context>
chip_gen: v7x
topology: tpu7x:2x2x1
jax: 0.10.0
libtpu: 0.0.40
codegen_flags: <defaults>
</compile_context>

<pallas_src>
import functools

import jax
import jax.numpy as jnp
from jax.experimental import pallas as pl
from jax.experimental.pallas import tpu as pltpu


# --------------------------------------------------------------------------
# Kernel
# --------------------------------------------------------------------------
def _fusion_kernel(l0_ref, l1_ref, l2_ref, w0_ref, w1_ref, w2_ref, b_ref,
                   r1_ref, r2_ref, *, precision):
    """z = sigmoid(l0@w0 + l1@w1 + l2@w2 + b); the two heads sit side-by-side
    in the 2C-wide accumulator and are written to separate output refs."""
    acc = jnp.dot(l0_ref[...], w0_ref[...],
                  preferred_element_type=jnp.float32, precision=precision)
    acc = acc + jnp.dot(l1_ref[...], w1_ref[...],
                        preferred_element_type=jnp.float32, precision=precision)
    acc = acc + jnp.dot(l2_ref[...], w2_ref[...],
                        preferred_element_type=jnp.float32, precision=precision)
    z = jax.nn.sigmoid(acc + b_ref[...])          # bias + sigmoid in f32 (VPU/EUP)
    C = r1_ref.shape[-1]
    r1_ref[...] = z[:, :C].astype(r1_ref.dtype)
    r2_ref[...] = z[:, C:].astype(r2_ref.dtype)


# --------------------------------------------------------------------------
# One-time parameter preparation (hoisted out of the forward path)
# --------------------------------------------------------------------------
def prepare_fusion_params(params, dtype=jnp.float32):
    """params: PyTorch nn.Linear-layout weights
         w12  [C, 2C], b12  [C]     (scale_1_2)
         w123 [C, 3C], b123 [C]     (scale_1_2_3)
       Returns (w0, w1, w2, b_fused):
         w_s [C, 2C]  — per-scale row block; columns [:C] feed ret1 (zeros for
                        s=2, since l2 does not feed scale_1_2), columns [C:]
                        feed ret2.
         b_fused [1, 2C] = [b12 | b123] (always f32)."""
    w12 = jnp.asarray(params["w12"], jnp.float32)     # [C, 2C]
    w123 = jnp.asarray(params["w123"], jnp.float32)   # [C, 3C]
    C = w12.shape[0]

    w12_t = w12.T      # [2C, C], rows grouped by scale (l0 block, l1 block)
    w123_t = w123.T    # [3C, C], rows grouped by scale (l0, l1, l2 blocks)

    zeros = jnp.zeros((C, C), jnp.float32)
    w0 = jnp.concatenate([w12_t[:C],        w123_t[:C]],        axis=1)  # [C, 2C]
    w1 = jnp.concatenate([w12_t[C:2 * C],   w123_t[C:2 * C]],   axis=1)  # [C, 2C]
    w2 = jnp.concatenate([zeros,            w123_t[2 * C:]],    axis=1)  # [C, 2C]

    b = jnp.concatenate(
        [jnp.asarray(params["b12"], jnp.float32),
         jnp.asarray(params["b123"], jnp.float32)]).reshape(1, 2 * C)

    return (w0.astype(dtype), w1.astype(dtype), w2.astype(dtype), b)


# --------------------------------------------------------------------------
# Tile / VMEM sizing
# --------------------------------------------------------------------------
def _round_up(x, m):
    return ((x + m - 1) // m) * m


def _choose_batch_tile(B, C, in_itemsize, w_itemsize, *,
                       target=2048, vmem_budget=48 * 1024 * 1024):
    """Pick a batch tile: as fat as the VMEM budget allows (capped at
    `target`), a multiple of 8, and producing >=2 grid steps when B allows so
    the "parallel" batch axis shards across v7x's two TensorCores."""
    if B <= 8:
        return B  # single block == full dims; (8,128) rule not triggered
    per_row = 2 * (3 * C * in_itemsize + 2 * C * 4)            # 3 in + 2 f32 out, x2 buffers
    fixed = 2 * (3 * C * 2 * C * w_itemsize + 2 * C * 4)       # weights + bias, x2 buffers
    tb = min(target, max(8, (vmem_budget - fixed) // per_row))
    tb = max(8, (tb // 8) * 8)
    if tb >= B:
        tb = max(8, _round_up(-(-B // 2), 8))                  # round_up(cdiv(B,2), 8)
    return int(min(tb, _round_up(B, 8)))


# --------------------------------------------------------------------------
# Forward wrapper
# --------------------------------------------------------------------------
def fusion_cls_forward(logits, fused_params, *, block_b=None, prefer_pallas=None):
    """logits: (l0, l1, l2), each [B, C] (RACNN per-scale logits).
       fused_params: output of prepare_fusion_params.
       Returns [ret1, ret2], each [B, C] f32."""
    l0, l1, l2 = logits
    B, C = l0.shape
    w0, w1, w2, b = fused_params

    precision = jax.lax.Precision.HIGHEST

    if prefer_pallas is None:
        # Tiny problems: pallas_call fixed cost dominates -> plain XLA epilogue
        # (ideally fused into the upstream RACNN kernel).
        prefer_pallas = B * C >= 4096
    if not prefer_pallas:
        z = (jnp.dot(l0, w0, precision=precision, preferred_element_type=jnp.float32)
             + jnp.dot(l1, w1, precision=precision, preferred_element_type=jnp.float32)
             + jnp.dot(l2, w2, precision=precision, preferred_element_type=jnp.float32)
             + b)
        z = jax.nn.sigmoid(z)
        return [z[:, :C], z[:, C:]]

    tb = _choose_batch_tile(B, C, l0.dtype.itemsize, w0.dtype.itemsize) \
        if block_b is None else int(block_b)
    grid = (pl.cdiv(B, tb),)

    # Explicit VMEM limit derived from actual double-buffered need (headroom
    # included); stays under v7x's 64 MiB physical VMEM.
    need = (2 * tb * (3 * C * l0.dtype.itemsize + 2 * C * 4)
            + 2 * (3 * C * 2 * C * w0.dtype.itemsize + 2 * C * 4))
    vmem_limit = int(min(60 << 20, max(32 << 20, need + (8 << 20))))

    kernel = functools.partial(_fusion_kernel, precision=precision)

    r1, r2 = pl.pallas_call(
        kernel,
        out_shape=(jax.ShapeDtypeStruct((B, C), jnp.float32),
                   jax.ShapeDtypeStruct((B, C), jnp.float32)),
        grid=grid,
        in_specs=[
            pl.BlockSpec((tb, C), lambda i: (i, 0)),          # l0 tile
            pl.BlockSpec((tb, C), lambda i: (i, 0)),          # l1 tile
            pl.BlockSpec((tb, C), lambda i: (i, 0)),          # l2 tile
            pl.BlockSpec((C, 2 * C), lambda i: (0, 0)),       # w0 (VMEM-resident)
            pl.BlockSpec((C, 2 * C), lambda i: (0, 0)),       # w1
            pl.BlockSpec((C, 2 * C), lambda i: (0, 0)),       # w2
            pl.BlockSpec((1, 2 * C), lambda i: (0, 0)),       # fused bias
        ],
        out_specs=(pl.BlockSpec((tb, C), lambda i: (i, 0)),   # ret1
                   pl.BlockSpec((tb, C), lambda i: (i, 0))),  # ret2
        compiler_params=pltpu.CompilerParams(
            dimension_semantics=("parallel",),
            vmem_limit_bytes=vmem_limit),
    )(l0, l1, l2, w0, w1, w2, b)
    return [r1, r2]


# --------------------------------------------------------------------------
# Pure-JAX reference (FusionCLS.forward head math)
# --------------------------------------------------------------------------
def _reference(logits, params):
    l0, l1, l2 = logits
    hp = jax.lax.Precision.HIGHEST
    cat12 = jnp.concatenate([l0, l1], axis=1)
    cat123 = jnp.concatenate([l0, l1, l2], axis=1)
    r1 = jax.nn.sigmoid(jnp.dot(cat12, params["w12"].T, precision=hp) + params["b12"])
    r2 = jax.nn.sigmoid(jnp.dot(cat123, params["w123"].T, precision=hp) + params["b123"])
    return [r1, r2]


def _make_params(key, C):
    k_w12, k_b12, k_w123, k_b123 = jax.random.split(key, 4)
    bound12 = 1.0 / jnp.sqrt(2.0 * C)
    bound123 = 1.0 / jnp.sqrt(3.0 * C)
    return {
        "w12": jax.random.uniform(k_w12, (C, 2 * C), jnp.float32, -bound12, bound12),
        "b12": jax.random.uniform(k_b12, (C,), jnp.float32, -bound12, bound12),
        "w123": jax.random.uniform(k_w123, (C, 3 * C), jnp.float32, -bound123, bound123),
        "b123": jax.random.uniform(k_b123, (C,), jnp.float32, -bound123, bound123),
    }


if __name__ == "__main__":
    key = jax.random.PRNGKey(0)

    # ---- Small demo shape consistent with the module (batch=2, classes=8) ----
    B, C = 2, 8
    k_l, k_p, k_l2, k_p2 = jax.random.split(key, 4)
    kl0, kl1, kl2 = jax.random.split(k_l, 3)
    # Stand-in for the (frozen, external) RACNN per-scale logits.
    logits = (jax.random.normal(kl0, (B, C), jnp.float32),
              jax.random.normal(kl1, (B, C), jnp.float32),
              jax.random.normal(kl2, (B, C), jnp.float32))
    params = _make_params(k_p, C)
    fused = prepare_fusion_params(params)

    # Force the Pallas path so the kernel itself is exercised at demo scale.
    out = fusion_cls_forward(logits, fused, prefer_pallas=True)
    out = jax.block_until_ready(out)
    ref = _reference(logits, params)
    assert jnp.allclose(out[0], ref[0], atol=1e-5), "ret1 mismatch (small)"
    assert jnp.allclose(out[1], ref[1], atol=1e-5), "ret2 mismatch (small)"

    # ---- Medium shape: exercises multi-step grid + auto-derived tile ----
    B2, C2 = 96, 128
    kl0b, kl1b, kl2b = jax.random.split(k_l2, 3)
    logits2 = (jax.random.normal(kl0b, (B2, C2), jnp.float32),
               jax.random.normal(kl1b, (B2, C2), jnp.float32),
               jax.random.normal(kl2b, (B2, C2), jnp.float32))
    params2 = _make_params(k_p2, C2)
    fused2 = prepare_fusion_params(params2)

    out2 = fusion_cls_forward(logits2, fused2)      # auto: Pallas, 2 grid steps
    out2 = jax.block_until_ready(out2)
    ref2 = _reference(logits2, params2)
    assert jnp.allclose(out2[0], ref2[0], atol=1e-5), "ret1 mismatch (medium)"
    assert jnp.allclose(out2[1], ref2[1], atol=1e-5), "ret2 mismatch (medium)"

    print("KERNEL_OK")
</pallas_src>

<mosaic_0001>
module attributes {stable_mosaic.version = 11 : i64} {
  func.func @_fusion_kernel(%arg0: i32, %arg1: memref<2x8xf32, #tpu.memory_space<vmem>>, %arg2: memref<2x8xf32, #tpu.memory_space<vmem>>, %arg3: memref<2x8xf32, #tpu.memory_space<vmem>>, %arg4: memref<8x16xf32, #tpu.memory_space<vmem>>, %arg5: memref<8x16xf32, #tpu.memory_space<vmem>>, %arg6: memref<8x16xf32, #tpu.memory_space<vmem>>, %arg7: memref<1x16xf32, #tpu.memory_space<vmem>>, %arg8: memref<2x8xf32, #tpu.memory_space<vmem>>, %arg9: memref<2x8xf32, #tpu.memory_space<vmem>>) attributes {dimension_semantics = [#tpu.dimension_semantics<parallel>], iteration_bounds = array<i64: 1>, scalar_prefetch = 0 : i64, scratch_operands = 0 : i64, tpu.core_type = #tpu.core_type<tc>, window_params = [{transform_indices = @transform_0, window_bounds = array<i64: 2, 8>}, {transform_indices = @transform_1, window_bounds = array<i64: 2, 8>}, {transform_indices = @transform_2, window_bounds = array<i64: 2, 8>}, {pipeline_mode = #tpu.pipeline_mode<synchronous>, transform_indices = @transform_3, window_bounds = array<i64: 8, 16>}, {pipeline_mode = #tpu.pipeline_mode<synchronous>, transform_indices = @transform_4, window_bounds = array<i64: 8, 16>}, {pipeline_mode = #tpu.pipeline_mode<synchronous>, transform_indices = @transform_5, window_bounds = array<i64: 8, 16>}, {pipeline_mode = #tpu.pipeline_mode<synchronous>, transform_indices = @transform_6, window_bounds = array<i64: 1, 16>}, {transform_indices = @transform_7, window_bounds = array<i64: 2, 8>}, {transform_indices = @transform_8, window_bounds = array<i64: 2, 8>}]} {
    %c0 = arith.constant 0 : index
    %c0_0 = arith.constant 0 : index
    %0 = vector.load %arg1[%c0, %c0_0] : memref<2x8xf32, #tpu.memory_space<vmem>>, vector<2x8xf32>
    %c0_1 = arith.constant 0 : index
    %c0_2 = arith.constant 0 : index
    %1 = vector.load %arg4[%c0_1, %c0_2] : memref<8x16xf32, #tpu.memory_space<vmem>>, vector<8x16xf32>
    %cst = arith.constant dense<0.000000e+00> : vector<2x16xf32>
    %2 = tpu.matmul %0, %1, %cst {dimension_numbers = #tpu.dot_dimension_numbers<[1], [0], [0], [1], [0, 0, 1, 1], [], []>, precision = #tpu.contract_precision<fp32>} : vector<2x8xf32>, vector<8x16xf32>, vector<2x16xf32> -> vector<2x16xf32>
    %c0_3 = arith.constant 0 : index
    %c0_4 = arith.constant 0 : index
    %3 = vector.load %arg2[%c0_3, %c0_4] : memref<2x8xf32, #tpu.memory_space<vmem>>, vector<2x8xf32>
    %c0_5 = arith.constant 0 : index
    %c0_6 = arith.constant 0 : index
    %4 = vector.load %arg5[%c0_5, %c0_6] : memref<8x16xf32, #tpu.memory_space<vmem>>, vector<8x16xf32>
    %cst_7 = arith.constant dense<0.000000e+00> : vector<2x16xf32>
    %5 = tpu.matmul %3, %4, %cst_7 {dimension_numbers = #tpu.dot_dimension_numbers<[1], [0], [0], [1], [0, 0, 1, 1], [], []>, precision = #tpu.contract_precision<fp32>} : vector<2x8xf32>, vector<8x16xf32>, vector<2x16xf32> -> vector<2x16xf32>
    %6 = arith.addf %2, %5 : vector<2x16xf32>
    %c0_8 = arith.constant 0 : index
    %c0_9 = arith.constant 0 : index
    %7 = vector.load %arg3[%c0_8, %c0_9] : memref<2x8xf32, #tpu.memory_space<vmem>>, vector<2x8xf32>
    %c0_10 = arith.constant 0 : index
    %c0_11 = arith.constant 0 : index
    %8 = vector.load %arg6[%c0_10, %c0_11] : memref<8x16xf32, #tpu.memory_space<vmem>>, vector<8x16xf32>
    %cst_12 = arith.constant dense<0.000000e+00> : vector<2x16xf32>
    %9 = tpu.matmul %7, %8, %cst_12 {dimension_numbers = #tpu.dot_dimension_numbers<[1], [0], [0], [1], [0, 0, 1, 1], [], []>, precision = #tpu.contract_precision<fp32>} : vector<2x8xf32>, vector<8x16xf32>, vector<2x16xf32> -> vector<2x16xf32>
    %10 = arith.addf %6, %9 : vector<2x16xf32>
    %c0_13 = arith.constant 0 : index
    %c0_14 = arith.constant 0 : index
    %11 = vector.load %arg7[%c0_13, %c0_14] : memref<1x16xf32, #tpu.memory_space<vmem>>, vector<1x16xf32>
    %12 = vector.broadcast %11 : vector<1x16xf32> to vector<2x16xf32>
    %13 = arith.addf %10, %12 : vector<2x16xf32>
    %14 = arith.negf %13 : vector<2x16xf32>
    %15 = math.exp %14 : vector<2x16xf32>
    %cst_15 = arith.constant 1.000000e+00 : f32
    %16 = vector.broadcast %cst_15 : f32 to vector<2x16xf32>
    %17 = arith.addf %16, %15 : vector<2x16xf32>
    %18 = arith.divf %16, %17 : vector<2x16xf32>
    %19 = vector.extract_strided_slice %18 {offsets = [0, 0], sizes = [2, 8], strides = [1, 1]} : vector<2x16xf32> to vector<2x8xf32>
    %c0_16 = arith.constant 0 : index
    %c0_17 = arith.constant 0 : index
    %20 = vector.load %arg8[%c0_16, %c0_17] : memref<2x8xf32, #tpu.memory_space<vmem>>, vector<2x8xf32>
    tpu.vector_store %arg8[%c0_16, %c0_17], %19 {strides = array<i32>} : memref<2x8xf32, #tpu.memory_space<vmem>>, vector<2x8xf32>,
    %21 = vector.extract_strided_slice %18 {offsets = [0, 8], sizes = [2, 8], strides = [1, 1]} : vector<2x16xf32> to vector<2x8xf32>
    %c0_18 = arith.constant 0 : index
    %c0_19 = arith.constant 0 : index
    %22 = vector.load %arg9[%c0_18, %c0_19] : memref<2x8xf32, #tpu.memory_space<vmem>>, vector<2x8xf32>
    tpu.vector_store %arg9[%c0_18, %c0_19], %21 {strides = array<i32>} : memref<2x8xf32, #tpu.memory_space<vmem>>, vector<2x8xf32>,
    return
  }
  func.func @transform_0(%arg0: i32) -> (i32, i32) {
    %c0_i32 = arith.constant 0 : i32
    %c0_i32_0 = arith.constant 0 : i32
    return %arg0, %c0_i32 : i32, i32
  }
  func.func @transform_1(%arg0: i32) -> (i32, i32) {
    %c0_i32 = arith.constant 0 : i32
    %c0_i32_0 = arith.constant 0 : i32
    return %arg0, %c0_i32 : i32, i32
  }
  func.func @transform_2(%arg0: i32) -> (i32, i32) {
    %c0_i32 = arith.constant 0 : i32
    %c0_i32_0 = arith.constant 0 : i32
    return %arg0, %c0_i32 : i32, i32
  }
  func.func @transform_3(%arg0: i32) -> (i32, i32) {
    %c0_i32 = arith.constant 0 : i32
    %c0_i32_0 = arith.constant 0 : i32
    %c0_i32_1 = arith.constant 0 : i32
    return %c0_i32, %c0_i32_0 : i32, i32
  }
  func.func @transform_4(%arg0: i32) -> (i32, i32) {
    %c0_i32 = arith.constant 0 : i32
    %c0_i32_0 = arith.constant 0 : i32
    %c0_i32_1 = arith.constant 0 : i32
    return %c0_i32, %c0_i32_0 : i32, i32
  }
  func.func @transform_5(%arg0: i32) -> (i32, i32) {
    %c0_i32 = arith.constant 0 : i32
    %c0_i32_0 = arith.constant 0 : i32
    %c0_i32_1 = arith.constant 0 : i32
    return %c0_i32, %c0_i32_0 : i32, i32
  }
  func.func @transform_6(%arg0: i32) -> (i32, i32) {
    %c0_i32 = arith.constant 0 : i32
    %c0_i32_0 = arith.constant 0 : i32
    %c0_i32_1 = arith.constant 0 : i32
    return %c0_i32, %c0_i32_0 : i32, i32
  }
  func.func @transform_7(%arg0: i32) -> (i32, i32) {
    %c0_i32 = arith.constant 0 : i32
    %c0_i32_0 = arith.constant 0 : i32
    return %arg0, %c0_i32 : i32, i32
  }
  func.func @transform_8(%arg0: i32) -> (i32, i32) {
    %c0_i32 = arith.constant 0 : i32
    %c0_i32_0 = arith.constant 0 : i32
    return %arg0, %c0_i32 : i32, i32
  }
}

</mosaic_0001>

<bundles_post_ra>
// kernel: tpu_custom_call.1
= control target key start
LH: loop header
LB: loop body
LE: loop exit
PB: predicated region body
PF: predicated region fallthrough
CT: control target
= control target key end

     0   :  { %14 = vsyncpa [#allocation3], 0  ;;  %s1937_s0 = inlined_call_operand.hbm [shape: f32[2,8], index: 0, kind: input, shape index: {}]   ;;  %s1938_s1 = inlined_call_operand.vmem [shape: f32[2,8], index: 1, kind: input, shape index: {}]   ;;  %s1939_s2 = inlined_call_operand.hbm [shape: f32[2,8], index: 2, kind: input, shape index: {}]   ;;  %s1940_s3 = inlined_call_operand.vmem [shape: f32[8,16], index: 3, kind: input, shape index: {}]   ;;  %s1941_s4 = inlined_call_operand.hbm [shape: f32[8,16], index: 4, kind: input, shape index: {}]   ;;  %s1942_s5 = inlined_call_operand.vmem [shape: f32[8,16], index: 5, kind: input, shape index: {}]   ;;  %s1943_s6 = inlined_call_operand.vmem [shape: f32[1,16], index: 6, kind: input, shape index: {}]   ;;  %s1944_s7 = inlined_call_operand.hbm [shape: f32[2,8], index: 7, kind: output, shape index: {0}]   ;;  %s1945_s8 = inlined_call_operand.hbm [shape: f32[2,8], index: 8, kind: output, shape index: {1}]  }
   0x1   :  { %15 = vsyncpa [#allocation6], 0 }
   0x2   :  { %16 = vsyncpa [#allocation4], 0 }
   0x3   :  { %17 = vsyncpa [#allocation10], 0  ;;  %s1729_s27 = smov [#allocation5]   ;;  %s1730_s29 = smov [#allocation2]  }
   0x4   :  { %s36_s28 = sshll.u32 %s1729_s27, 4  ;;  %s24_s30 = sshll.u32 %s1730_s29, 4  ;;  %s37_s28 = int_to_ptr.vmem [resolvable:$true] %s36_s28  ;;  %s25_s30 = int_to_ptr.vmem [resolvable:$true] %s24_s30 }
   0x5   :  { %s1611_s11 = scalar_lea.hbm %s1939_s2, 32 }
   0x6   :  { %p1612_p0 = scmp.ne.s32.totalorder %s1939_s2, %s1611_s11  ;;  %p1615_p1 = scmp.lt.u32.totalorder %s1611_s11, %s1939_s2 }
   0x8   :  { %p1617_p2 = pnand %p1615_p1, %p1612_p0 }
   0xa   :  { %1620 = shalt.err (!%p1617_p2)
}
   0xb   :  { %s1621_s16 = scalar_lea.vmem %s37_s28, 32  ;;  %p1626_p4 = scmp.lt.s32.totalorder %s37_s28, %s37_s28 }
   0xc   :  { %p1622_p3 = scmp.ne.s32.totalorder %s37_s28, %s1621_s16  ;;  %p1627_p5 = scmp.lt.s32.totalorder %s1621_s16, %s1621_s16 }
   0xe   :  { %p1628_p6 = por %p1627_p5, %p1626_p4 }
  0x10   :  { %p1629_p7 = pnand %p1628_p6, %p1622_p3 }
  0x12   :  { %1632 = shalt.err (!%p1629_p7)
}
  0x13   :  { %39 = dma.hbm_to_vmem [thread:$0]  %s1939_s2, 32, %s37_s28, [#allocation6]  }
  0x14   :  { %s1633_s21 = scalar_lea.hbm %s1937_s0, 32 }
  0x15   :  { %p1634_p8 = scmp.ne.s32.totalorder %s1937_s0, %s1633_s21  ;;  %p1637_p9 = scmp.lt.u32.totalorder %s1633_s21, %s1937_s0 }
  0x17   :  { %p1639_p10 = pnand %p1637_p9, %p1634_p8 }
  0x19   :  { %1642 = shalt.err (!%p1639_p10)
}
  0x1a   :  { %s1643_s26 = scalar_lea.vmem %s25_s30, 32  ;;  %p1648_p12 = scmp.lt.s32.totalorder %s25_s30, %s25_s30 }
  0x1b   :  { %p1644_p11 = scmp.ne.s32.totalorder %s25_s30, %s1643_s26  ;;  %p1649_p13 = scmp.lt.s32.totalorder %s1643_s26, %s1643_s26 }
  0x1d   :  { %p1650_p0 = por %p1649_p13, %p1648_p12 }
  0x1f   :  { %p1651_p1 = pnand %p1650_p0, %p1644_p11 }
  0x21   :  { %1654 = shalt.err (!%p1651_p1)
}
  0x22   :  { %27 = dma.hbm_to_vmem [thread:$0]  %s1937_s0, 32, %s25_s30, [#allocation3]  }
  0x23   :  { %s1731_s28 = smov [#allocation7]   ;;  %s1655_s11 = scalar_lea.hbm %s1941_s4, 128 }
  0x24   :  { %s48_s29 = sshll.u32 %s1731_s28, 4  ;;  %p1656_p2 = scmp.ne.s32.totalorder %s1941_s4, %s1655_s11  ;;  %s49_s29 = int_to_ptr.vmem [resolvable:$true] %s48_s29 }
  0x25   :  { %p1659_p3 = scmp.lt.u32.totalorder %s1655_s11, %s1941_s4 }
  0x27   :  { %p1661_p4 = pnand %p1659_p3, %p1656_p2 }
  0x29   :  { %1664 = shalt.err (!%p1661_p4)
}
  0x2a   :  { %s1665_s16 = scalar_lea.vmem %s49_s29, 128  ;;  %p1670_p6 = scmp.lt.s32.totalorder %s49_s29, %s49_s29 }
  0x2b   :  { %p1666_p5 = scmp.ne.s32.totalorder %s49_s29, %s1665_s16  ;;  %p1671_p7 = scmp.lt.s32.totalorder %s1665_s16, %s1665_s16 }
  0x2d   :  { %p1672_p8 = por %p1671_p7, %p1670_p6 }
  0x2f   :  { %p1673_p9 = pnand %p1672_p8, %p1666_p5 }
  0x31   :  { %1676 = shalt.err (!%p1673_p9)
}
  0x32   :  { %51 = dma.hbm_to_vmem [thread:$0]  %s1941_s4, 128, %s49_s29, [#allocation6]  }
  0x33   :  { %1721 = dma.done.wait [#allocation3], 32  }
  0x34   :  { %1722 = vsyncadd [#allocation3], 4294967264 }
  0x35   :  { %1723 = dma.done.wait [#allocation6], 160  }
  0x36   :  { %1724 = vsyncadd [#allocation6], 4294967136  ;;  %v1732_v0 = vmov 0.0   ;;  %vm1733_vm0 = vmmov 0   ;;  %vm69_vm1 = vcmask 64512   ;;  %v68_v1 = vld [vmem:[#allocation7] sm:$0xff] }
  0x37   :  { %1509 = vmatprep.subr.mxu0 %v1732_v0  ;;  %1514 = vmatprep.subr.mxu1 %v1732_v0  ;;  %v67_v2 = vld [vmem:[%s1938_s1] sm:$0x3]  ;;  %v74_v4 = vand.u32 4294901760, %v68_v1  ;;  %v65_v6 = vld [vmem:[#allocation2] sm:$0x3]  ;;  %s1734_s21 = smov [#allocation8]  }
  0x38   :  { %1511 = vmatprep.mubr.msk.f32.mxu0 %vm1733_vm0, %v1732_v0  ;;  %1516 = vmatprep.mubr.msk.f32.mxu1 %vm1733_vm0, %v1732_v0  ;;  %v66_v3 = vld [vmem:[%s1940_s3] sm:$0xff]  ;;  %v71_v5 = vsel %vm69_vm1, %v67_v2, 0  ;;  %v520_v9 = vsel %vm69_vm1, %v65_v6, 0  ;;  %v968_v22 = vld [vmem:[#allocation5] sm:$0x3]  ;;  %s1447_s22 = sshll.u32 %s1734_s21, 4  ;;  %s1448_s22 = int_to_ptr.vmem [resolvable:$true] %s1447_s22 }
  0x39   :  { %v139_v7 = vand.u32 4294901760, %v71_v5  ;;  %v1831_v8 = vand.u32 4294901760, %v66_v3  ;;  %1510 = vmatpush3.msra.mxu0 %v74_v4  ;;  %v151_v10 = vsub.f32 %v68_v1, %v74_v4  ;;  %v1835_v12 = vand.u32 4294901760, %v520_v9  ;;  %v969_v23 = vld [vmem:[%s1942_s5] sm:$0xff]  ;;  %s1735_s23 = smov 120   ;;  %s1677_s24 = scalar_lea.vmem %s1448_s22, 32 }
  0x3a   :  { %1519 = vmatprep.subr.mxu0 %v1732_v0  ;;  %v971_v25 = vsel %vm69_vm1, %v968_v22, 0  ;;  %v1846_v27 = vand.u32 4294901760, %v969_v23  ;;  %vm1434_vm2 = vcmask 58368   ;;  %p1678_p10 = scmp.ne.s32.totalorder %s1448_s22, %s1677_s24  ;;  %p1682_p11 = scmp.lt.s32.totalorder %s1448_s22, %s1448_s22 }
  0x3b   :  { %v140_v11 = vsub.f32 %v71_v5, %v139_v7  ;;  %v152_v13 = vand.u32 4294901760, %v151_v10  ;;  %v600_v15 = vsub.f32 %v66_v3, %v1831_v8  ;;  %v589_v18 = vsub.f32 %v520_v9, %v1835_v12  ;;  %p1683_p12 = scmp.lt.s32.totalorder %s1677_s24, %s1677_s24 }
  0x3c   :  { %v1851_v29 = vand.u32 4294901760, %v971_v25  ;;  %v1051_v31 = vsub.f32 %v969_v23, %v1846_v27 }
  0x3d   :  { %v141_v14 = vand.u32 4294901760, %v140_v11  ;;  %v153_v16 = vsub.f32 %v151_v10, %v152_v13  ;;  %v601_v21 = vand.u32 4294901760, %v600_v15  ;;  %v590_v24 = vand.u32 4294901760, %v589_v18  ;;  %p1684_p13 = por %p1683_p12, %p1682_p11 }
  0x3e   :  { %v1040_v33 = vsub.f32 %v971_v25, %v1851_v29  ;;  %v1052_v34 = vand.u32 4294901760, %v1051_v31 }
  0x3f   :  { %v142_v17 = vsub.f32 %v140_v11, %v141_v14  ;;  %v154_v19 = vand.u32 4294901760, %v153_v16  ;;  %v602_v26 = vsub.f32 %v600_v15, %v601_v21  ;;  %v591_v28 = vsub.f32 %v589_v18, %v590_v24  ;;  %p1685_p0 = pnand %p1684_p13, %p1678_p10 }
  0x40   :  { %v1041_v35 = vand.u32 4294901760, %v1040_v33  ;;  %v1053_v36 = vsub.f32 %v1051_v31, %v1052_v34 }
  0x41   :  { %v143_v20 = vand.u32 4294901760, %v142_v17  ;;  %1515 = vmatpush3.msra.mxu1 %v154_v19  ;;  %v603_v30 = vand.u32 4294901760, %v602_v26  ;;  %v592_v32 = vand.u32 4294901760, %v591_v28  ;;  %v1471_v28 = vld [vmem:[%s1943_s6] ss:$0 sm:$0xff] }
  0x42   :  { %1517 = vmatmul.mubr.f32.vlgmr.msra.gmra.mrb[0].mxu1 %v139_v7  ;;  %1524 = vmatprep.subr.mxu1 %v1732_v0  ;;  %v1042_v37 = vsub.f32 %v1040_v33, %v1041_v35  ;;  %v1054_v38 = vand.u32 4294901760, %v1053_v36 }
  0x43   :  { %1512 = vmatmul.mubr.f32.vlgmr.msra.gmra.mrb[0].mxu0 %v143_v20  ;;  %1525 = vmatpush3.msra.mxu1 %v74_v4 }
  0x44   :  { %1520 = vmatpush3.msra.mxu0 %v151_v10  ;;  %1521 = vmatprep.mubr.msk.f32.mxu0 %vm1733_vm0, %v1732_v0  ;;  %v1043_v39 = vand.u32 4294901760, %v1042_v37 }
  0x45   :  { %1526 = vmatprep.mubr.msk.f32.mxu1 %vm1733_vm0, %v1732_v0  ;;  %1529 = vmatprep.subr.mxu0 %v1732_v0 }
  0x46   :  { %1527 = vmatmul.mubr.f32.vlgmr.msra.gmra.mrb[2].mxu1 %v141_v14  ;;  %1534 = vmatprep.subr.mxu1 %v1732_v0 }
  0x47   :  { %1522 = vmatmul.mubr.f32.vlgmr.msra.gmra.mrb[2].mxu0 %v140_v11  ;;  %1535 = vmatpush3.msra.mxu1 %v74_v4 }
  0x48   :  { %1530 = vmatpush3.msra.mxu0 %v152_v13  ;;  %1531 = vmatprep.mubr.msk.f32.mxu0 %vm1733_vm0, %v1732_v0 }
  0x49   :  { %1536 = vmatprep.mubr.msk.f32.mxu1 %vm1733_vm0, %v1732_v0  ;;  %1539 = vmatprep.subr.mxu0 %v1732_v0 }
  0x4a   :  { %1537 = vmatmul.mubr.f32.vlgmr.msra.gmra.mrb[4].mxu1 %v139_v7  ;;  %1544 = vmatprep.subr.mxu1 %v1732_v0 }
  0x4b   :  { %1532 = vmatmul.mubr.f32.vlgmr.msra.gmra.mrb[4].mxu0 %v139_v7  ;;  %1545 = vmatpush3.msra.mxu1 %v603_v30 }
  0x4c   :  { %1540 = vmatpush3.msra.mxu0 %v1831_v8  ;;  %1541 = vmatprep.mubr.msk.f32.mxu0 %vm1733_vm0, %v1732_v0 }
  0x4d   :  { %1546 = vmatprep.mubr.msk.f32.mxu1 %vm1733_vm0, %v1732_v0  ;;  %1549 = vmatprep.subr.mxu0 %v1732_v0 }
  0x4e   :  { %1547 = vmatmul.mubr.f32.vlgmr.msra.gmra.mrb[6].mxu1 %v1835_v12  ;;  %1554 = vmatprep.subr.mxu1 %v1732_v0 }
  0x4f   :  { %1542 = vmatmul.mubr.f32.vlgmr.msra.gmra.mrb[6].mxu0 %v592_v32  ;;  %1555 = vmatpush3.msra.mxu1 %v1831_v8 }
  0x50   :  { %1550 = vmatpush3.msra.mxu0 %v600_v15  ;;  %1551 = vmatprep.mubr.msk.f32.mxu0 %vm1733_vm0, %v1732_v0 }
  0x51   :  { %1556 = vmatprep.mubr.msk.f32.mxu1 %vm1733_vm0, %v1732_v0  ;;  %1559 = vmatprep.subr.mxu0 %v1732_v0 }
  0x52   :  { %1557 = vmatmul.mubr.f32.vlgmr.msra.gmra.mrb[8].mxu1 %v590_v24  ;;  %1564 = vmatprep.subr.mxu1 %v1732_v0 }
  0x53   :  { %1552 = vmatmul.mubr.f32.vlgmr.msra.gmra.mrb[8].mxu0 %v589_v18  ;;  %1565 = vmatpush3.msra.mxu1 %v1831_v8 }
  0x54   :  { %1560 = vmatpush3.msra.mxu0 %v601_v21  ;;  %1561 = vmatprep.mubr.msk.f32.mxu0 %vm1733_vm0, %v1732_v0 }
  0x55   :  { %1566 = vmatprep.mubr.msk.f32.mxu1 %vm1733_vm0, %v1732_v0  ;;  %1569 = vmatprep.subr.mxu0 %v1732_v0 }
  0x56   :  { %1567 = vmatmul.mubr.f32.vlgmr.msra.gmra.mrb[10].mxu1 %v1835_v12  ;;  %1574 = vmatprep.subr.mxu1 %v1732_v0 }
  0x57   :  { %1562 = vmatmul.mubr.f32.vlgmr.msra.gmra.mrb[10].mxu0 %v1835_v12  ;;  %1575 = vmatpush3.msra.mxu1 %v1054_v38 }
  0x58   :  { %1570 = vmatpush3.msra.mxu0 %v1846_v27  ;;  %1571 = vmatprep.mubr.msk.f32.mxu0 %vm1733_vm0, %v1732_v0 }
  0x59   :  { %1576 = vmatprep.mubr.msk.f32.mxu1 %vm1733_vm0, %v1732_v0  ;;  %1579 = vmatprep.subr.mxu0 %v1732_v0 }
  0x5a   :  { %1577 = vmatmul.mubr.f32.vlgmr.msra.gmra.mrb[12].mxu1 %v1851_v29  ;;  %1584 = vmatprep.subr.mxu1 %v1732_v0 }
  0x5b   :  { %1572 = vmatmul.mubr.f32.vlgmr.msra.gmra.mrb[12].mxu0 %v1043_v39  ;;  %1585 = vmatpush3.msra.mxu1 %v1846_v27 }
  0x5c   :  { %1580 = vmatpush3.msra.mxu0 %v1051_v31  ;;  %1581 = vmatprep.mubr.msk.f32.mxu0 %vm1733_vm0, %v1732_v0 }
  0x5d   :  { %1589 = vmatprep.subr.mxu0 %v1732_v0  ;;  %1586 = vmatprep.mubr.msk.f32.mxu1 %vm1733_vm0, %v1732_v0 }
  0x5e   :  { %1587 = vmatmul.mubr.f32.vlgmr.msra.gmra.mrb[14].mxu1 %v1041_v35  ;;  %1594 = vmatprep.subr.mxu1 %v1732_v0 }
  0x5f   :  { %1582 = vmatmul.mubr.f32.vlgmr.msra.gmra.mrb[14].mxu0 %v1040_v33  ;;  %1595 = vmatpush3.msra.mxu1 %v1846_v27 }
  0x60   :  { %1590 = vmatpush3.msra.mxu0 %v1052_v34  ;;  %1591 = vmatprep.mubr.msk.f32.mxu0 %vm1733_vm0, %v1732_v0 }
  0x61   :  { %1596 = vmatprep.mubr.msk.f32.mxu1 %vm1733_vm0, %v1732_v0 }
  0x62   :  { %1597 = vmatmul.mubr.f32.vlgmr.msra.gmra.mrb[16].mxu1 %v1851_v29 }
  0x63   :  { %1592 = vmatmul.mubr.f32.vlgmr.msra.gmra.mrb[16].mxu0 %v1851_v29 }
 0x115   :  { %v221_v41 = vpop.f32.mrb[0].mxu1 }
 0x116   :  { %v145_v40 = vpop.f32.mrb[0].mxu0  ;;  %v1518_v44 = vpop.f32.mrb[1].mxu1 }
 0x117   :  { %v222_v42 = vadd.f32 %v221_v41, %v145_v40  ;;  %v1513_v43 = vpop.f32.mrb[1].mxu0 }
 0x119   :  { %v369_v46 = vpop.f32.mrb[2].mxu1 }
 0x11a   :  { %v295_v45 = vpop.f32.mrb[2].mxu0  ;;  %v1528_v49 = vpop.f32.mrb[3].mxu1 }
 0x11b   :  { %v296_v47 = vadd.f32 %v295_v45, %v222_v42  ;;  %v1523_v48 = vpop.f32.mrb[3].mxu0 }
 0x11d   :  { %v370_v50 = vadd.f32 %v369_v46, %v296_v47  ;;  %v515_v52 = vpop.f32.mrb[4].mxu1 }
 0x11e   :  { %v443_v51 = vpop.f32.mrb[4].mxu0  ;;  %v1538_v55 = vpop.f32.mrb[5].mxu1 }
 0x11f   :  { %v444_v53 = vadd.f32 %v443_v51, %v370_v50  ;;  %v1533_v54 = vpop.f32.mrb[5].mxu0 }
 0x121   :  { %v516_v56 = vadd.f32 %v515_v52, %v444_v53  ;;  %v670_v58 = vpop.f32.mrb[6].mxu1 }
 0x122   :  { %v594_v57 = vpop.f32.mrb[6].mxu0  ;;  %v1548_v61 = vpop.f32.mrb[7].mxu1 }
 0x123   :  { %v595_v59 = vadd.f32 %v594_v57, %v516_v56  ;;  %v1543_v60 = vpop.f32.mrb[7].mxu0 }
 0x125   :  { %v671_v62 = vadd.f32 %v670_v58, %v595_v59  ;;  %v818_v0 = vpop.f32.mrb[8].mxu1 }
 0x126   :  { %v744_v63 = vpop.f32.mrb[8].mxu0  ;;  %v1558_v3 = vpop.f32.mrb[9].mxu1 }
 0x127   :  { %v745_v1 = vadd.f32 %v744_v63, %v671_v62  ;;  %v1553_v2 = vpop.f32.mrb[9].mxu0 }
 0x129   :  { %v819_v4 = vadd.f32 %v818_v0, %v745_v1  ;;  %v964_v6 = vpop.f32.mrb[10].mxu1 }
 0x12a   :  { %v892_v5 = vpop.f32.mrb[10].mxu0  ;;  %v1568_v9 = vpop.f32.mrb[11].mxu1 }
 0x12b   :  { %v893_v7 = vadd.f32 %v892_v5, %v819_v4  ;;  %v1563_v8 = vpop.f32.mrb[11].mxu0 }
 0x12d   :  { %v965_v10 = vadd.f32 %v964_v6, %v893_v7  ;;  %v1121_v12 = vpop.f32.mrb[12].mxu1 }
 0x12e   :  { %v1045_v11 = vpop.f32.mrb[12].mxu0  ;;  %v1578_v15 = vpop.f32.mrb[13].mxu1 }
 0x12f   :  { %v1122_v13 = vadd.f32 %v1121_v12, %v1045_v11  ;;  %v1573_v14 = vpop.f32.mrb[13].mxu0 }
 0x131   :  { %v1269_v17 = vpop.f32.mrb[14].mxu1 }
 0x132   :  { %v1195_v16 = vpop.f32.mrb[14].mxu0  ;;  %v1588_v20 = vpop.f32.mrb[15].mxu1 }
 0x133   :  { %v1196_v18 = vadd.f32 %v1195_v16, %v1122_v13  ;;  %v1583_v19 = vpop.f32.mrb[15].mxu0 }
 0x135   :  { %v1270_v21 = vadd.f32 %v1269_v17, %v1196_v18  ;;  %v1415_v23 = vpop.f32.mrb[16].mxu1 }
 0x136   :  { %v1343_v22 = vpop.f32.mrb[16].mxu0  ;;  %v1598_v26 = vpop.f32.mrb[17].mxu1 }
 0x137   :  { %v1344_v24 = vadd.f32 %v1343_v22, %v1270_v21  ;;  %v1593_v25 = vpop.f32.mrb[17].mxu0 }
 0x139   :  { %v1416_v27 = vadd.f32 %v1415_v23, %v1344_v24 }
 0x13b   :  { %v1419_v29 = vadd.f32 %v1416_v27, %v965_v10 }
 0x13d   :  { %v1427_v30 = vadd.f32 %v1471_v28, %v1419_v29 }
 0x13f   :  { %v1472_v31 = vmul.f32 -1.442695, %v1427_v30 }
 0x141   :  { %1607 = vpow2.f32 %v1472_v31 }
 0x14b   :  { %v1608_v32 = vpop.eup %1607 }
 0x14c   :  { %v1431_v33 = vadd.f32 1.0, %v1608_v32 }
 0x14e   :  { %1609 = vrcp.f32 %v1431_v33 }
 0x158   :  { %v1610_v34 = vpop.eup %1609 }
 0x159   :  { %1437 = vrot.lane.b32.xlu0 %v1610_v34, %s1735_s23  ;;  %1435 = vst.msk [vmem:[#allocation8] sm:$0x3] %vm1434_vm2, %v1610_v34 }
 0x15a   :  { %1688 = shalt.err (!%p1685_p0)
}
 0x15b   :  { %s1689_s26 = scalar_lea.hbm %s1944_s7, 32 }
 0x15c   :  { %p1690_p1 = scmp.ne.s32.totalorder %s1944_s7, %s1689_s26  ;;  %p1693_p2 = scmp.lt.u32.totalorder %s1689_s26, %s1944_s7 }
 0x15e   :  { %p1695_p3 = pnand %p1693_p2, %p1690_p1 }
 0x160   :  { %1698 = shalt.err (!%p1695_p3)
}
 0x161   :  { %1450 = dma.vmem_to_hbm [thread:$0]  %s1448_s22, 32, %s1944_s7, [#allocation4]  }
 0x162   :  { %s1736_s11 = smov [#allocation9]  }
 0x163   :  { %s1457_s12 = sshll.u32 %s1736_s11, 4  ;;  %s1458_s12 = int_to_ptr.vmem [resolvable:$true] %s1457_s12 }
 0x164   :  { %s1699_s13 = scalar_lea.vmem %s1458_s12, 32  ;;  %p1704_p5 = scmp.lt.s32.totalorder %s1458_s12, %s1458_s12 }
 0x165   :  { %p1700_p4 = scmp.ne.s32.totalorder %s1458_s12, %s1699_s13  ;;  %p1705_p6 = scmp.lt.s32.totalorder %s1699_s13, %s1699_s13 }
 0x167   :  { %p1706_p7 = por %p1705_p6, %p1704_p5 }
 0x169   :  { %p1707_p8 = pnand %p1706_p7, %p1700_p4 }
 0x1cb   :  { %v1438_v35 = vpop.permute.xlu0 %1437 }
 0x1cc   :  { %1440 = vst.msk [vmem:[#allocation9] sm:$0x3] %vm1434_vm2, %v1438_v35 }
 0x1cd   :  { %1710 = shalt.err (!%p1707_p8)
}
 0x1ce   :  { %s1711_s16 = scalar_lea.hbm %s1945_s8, 32 }
 0x1cf   :  { %p1712_p9 = scmp.ne.s32.totalorder %s1945_s8, %s1711_s16  ;;  %p1715_p10 = scmp.lt.u32.totalorder %s1711_s16, %s1945_s8 }
 0x1d1   :  { %p1717_p11 = pnand %p1715_p10, %p1712_p9 }
 0x1d3   :  { %1720 = shalt.err (!%p1717_p11)
}
 0x1d4   :  { %1460 = dma.vmem_to_hbm [thread:$0]  %s1458_s12, 32, %s1945_s8, [#allocation10]  }
 0x1d5   :  { %1725 = dma.done.wait [#allocation4], 32  }
 0x1d6   :  { %1726 = vsyncadd [#allocation4], 4294967264 }
 0x1d7   :  { %1727 = dma.done.wait [#allocation10], 32  }
 0x1d8   :  { %1728 = vsyncadd [#allocation10], 4294967264 }
 0x1d9   :  { %1467 = vsyncpa [#allocation3], 1 }
 0x1da   :  { %1468 = vsyncpa [#allocation6], 1 }
 0x1db   :  { %1469 = vsyncpa [#allocation4], 1 }
 0x1dc   :  { %1470 = vsyncpa [#allocation10], 1 }

</bundles_post_ra>
